<compile_context>
chip_gen: v7x
topology: tpu7x:2x2x1
jax: 0.10.0
libtpu: 0.0.40
codegen_flags: <defaults>
</compile_context>

<pallas_src>
import functools
import math

import jax
import jax.numpy as jnp
from jax.experimental import pallas as pl
from jax.experimental.pallas import tpu as pltpu


_BLOCK_M = 256  # node-row block; >=256 fills the 256-wide MXU on v6e/v7x


def _round_up(v, m):
    return (v + m - 1) // m * m


def _pad2(a, rows, cols):
    return jnp.pad(a, ((0, rows - a.shape[0]), (0, cols - a.shape[1])))


def _vmem_limit_bytes(buffers):
    """Scoped-VMEM request: 2x (double buffering) each pipelined block + headroom.

    buffers: iterable of (block_shape, itemsize_bytes).
    Never below the 32 MiB default; capped at 64 MiB (<= physical on all gens).
    """
    total = sum(2 * math.prod(shape) * itemsize for shape, itemsize in buffers)
    return int(min(64 * 1024 * 1024, max(total + 8 * 1024 * 1024, 32 * 1024 * 1024)))


# ---------------------------------------------------------------------------
# Pallas kernels
# ---------------------------------------------------------------------------

def _init_proj_kernel(x_ref, w_in_ref, b_in_ref, x0_ref):
    """x0 = relu(x @ W_in + b_in) for one row block of nodes."""
    acc = jnp.dot(x_ref[...].astype(jnp.bfloat16), w_in_ref[...],
                  preferred_element_type=jnp.float32)
    x0_ref[...] = jnp.maximum(acc + b_in_ref[...], 0.0)


def _gcn2_layer_kernel(p_ref, xt_ref, x0a_ref, w_eff_ref, out_ref):
    """One GCN2Conv layer (shared_weights=True) with blends folded into operands.

        out = relu( (P' @ x_tmp + alpha*x0) @ W_eff )

    p_ref    : (block_m, n_pad)  bf16  row block of P' = (1-alpha) * norm-adj
    xt_ref   : (n_pad,  h_pad)   bf16  previous-layer activations (resident)
    x0a_ref  : (block_m, h_pad)  f32   row block of alpha * x0
    w_eff_ref: (h_pad,  h_pad)   bf16  (1-beta)*I + beta*W1
    """
    h = jnp.dot(p_ref[...], xt_ref[...], preferred_element_type=jnp.float32)
    s = h + x0a_ref[...]
    out = jnp.dot(s.astype(jnp.bfloat16), w_eff_ref[...],
                  preferred_element_type=jnp.float32)
    out_ref[...] = jnp.maximum(out, 0.0)


# ---------------------------------------------------------------------------
# One-time graph / parameter preprocessing (hoisted out of the forward path)
# ---------------------------------------------------------------------------

def gcn_norm_dense(edge_index, num_nodes):
    """Dense P = D^-1/2 (A + I) D^-1/2 with A[dst, src] = 1 (one-time prep)."""
    src, dst = edge_index[0], edge_index[1]
    a = jnp.zeros((num_nodes, num_nodes), jnp.float32).at[dst, src].set(1.0)
    idx = jnp.arange(num_nodes)
    a = a.at[idx, idx].set(1.0)  # add_remaining_self_loops: diagonal forced to 1
    deg = jnp.sum(a, axis=1)
    d_inv_sqrt = jnp.where(deg > 0.0, jax.lax.rsqrt(deg), 0.0)
    return d_inv_sqrt[:, None] * a * d_inv_sqrt[None, :]


def prepare_gcn2(p, params, alpha, theta, layer_num, block_m=_BLOCK_M):
    """Pad / scale / cast everything once so the per-forward path is minimal."""
    n = p.shape[0]
    f_in, hidden = params["w_in"].shape
    n_pad = _round_up(n, block_m)
    h_pad = _round_up(hidden, 128)

    eye = jnp.eye(h_pad, dtype=jnp.float32)
    w_eff = []
    for i in range(layer_num):
        beta = math.log(theta / (i + 1) + 1.0)
        w1 = _pad2(params["w_conv"][i].astype(jnp.float32), h_pad, h_pad)
        w_eff.append(((1.0 - beta) * eye + beta * w1).astype(jnp.bfloat16))

    return {
        "p": _pad2((1.0 - alpha) * p, n_pad, n_pad).astype(jnp.bfloat16),
        "w_in": _pad2(params["w_in"].astype(jnp.float32), f_in, h_pad).astype(jnp.bfloat16),
        "b_in": _pad2(params["b_in"].astype(jnp.float32), 1, h_pad),
        "w_eff": tuple(w_eff),
        "w_cls": params["w_cls"].astype(jnp.float32),
        "b_cls": params["b_cls"].astype(jnp.float32),
        "alpha": jnp.float32(alpha),
    }


# ---------------------------------------------------------------------------
# Forward pass
# ---------------------------------------------------------------------------

@functools.partial(jax.jit, static_argnames=("block_m",))
def gcn2_forward(x, prep, *, block_m=_BLOCK_M):
    n, f_in = x.shape
    n_pad = prep["p"].shape[0]
    h_pad = prep["w_in"].shape[1]
    hidden = prep["w_cls"].shape[0]
    grid = (n_pad // block_m,)

    # Padded node rows of x are zero, so x0's padded rows are relu(b_in) != 0.
    # This is benign: P's padded columns are zero (padded rows never feed real
    # rows) and padded rows/cols are sliced off before the classifier head.
    x_pad = jnp.pad(x.astype(jnp.float32), ((0, n_pad - n), (0, 0)))

    init_vmem = _vmem_limit_bytes([((block_m, f_in), 4),
                                   ((f_in, h_pad), 2),
                                   ((1, h_pad), 4),
                                   ((block_m, h_pad), 4)])
    x0 = pl.pallas_call(
        _init_proj_kernel,
        out_shape=jax.ShapeDtypeStruct((n_pad, h_pad), jnp.float32),
        grid=grid,
        in_specs=[pl.BlockSpec((block_m, f_in), lambda i: (i, 0)),
                  pl.BlockSpec((f_in, h_pad), lambda i: (0, 0)),
                  pl.BlockSpec((1, h_pad), lambda i: (0, 0))],
        out_specs=pl.BlockSpec((block_m, h_pad), lambda i: (i, 0)),
        compiler_params=pltpu.CompilerParams(
            dimension_semantics=("parallel",), vmem_limit_bytes=init_vmem),
    )(x_pad, prep["w_in"], prep["b_in"])

    x0a = prep["alpha"] * x0              # hoisted above the layer loop
    xt_bf16 = x0.astype(jnp.bfloat16)
    emb = x0                              # result if layer_num == 0

    layer_vmem = _vmem_limit_bytes([((block_m, n_pad), 2),
                                    ((n_pad, h_pad), 2),
                                    ((block_m, h_pad), 4),
                                    ((h_pad, h_pad), 2),
                                    ((block_m, h_pad), 4)])
    layer_call = pl.pallas_call(
        _gcn2_layer_kernel,
        out_shape=jax.ShapeDtypeStruct((n_pad, h_pad), jnp.float32),
        grid=grid,
        in_specs=[pl.BlockSpec((block_m, n_pad), lambda i: (i, 0)),   # P' row block
                  pl.BlockSpec((n_pad, h_pad), lambda i: (0, 0)),     # x_tmp (resident)
                  pl.BlockSpec((block_m, h_pad), lambda i: (i, 0)),   # alpha*x0 block
                  pl.BlockSpec((h_pad, h_pad), lambda i: (0, 0))],    # W_eff
        out_specs=pl.BlockSpec((block_m, h_pad), lambda i: (i, 0)),
        compiler_params=pltpu.CompilerParams(
            dimension_semantics=("parallel",), vmem_limit_bytes=layer_vmem),
    )

    # TODO(synk): dropout between layers is a no-op (eval mode).
    for w_eff in prep["w_eff"]:
        emb = layer_call(prep["p"], xt_bf16, x0a, w_eff)
        xt_bf16 = emb.astype(jnp.bfloat16)   # x_tmp round-trips in bf16

    # Classifier head on the sliced (n, hidden) slab: trivially cheap XLA,
    # avoids 128-lane-padded logits/softmax writeback and 1-lane argmax store.
    embedding = emb[:n, :hidden]
    logits = embedding @ prep["w_cls"] + prep["b_cls"]
    soft_label = jax.nn.softmax(logits, axis=1)
    hard_label = jnp.argmax(soft_label, axis=1)
    return logits, {"embedding": embedding,
                    "soft_label": soft_label,
                    "hard_label": hard_label}


# ---------------------------------------------------------------------------
# Pure-JAX f32 reference of the original math (for a sanity check)
# ---------------------------------------------------------------------------

def gcn2_reference(x, p, params, alpha, theta, layer_num):
    x0 = jnp.maximum(x @ params["w_in"] + params["b_in"], 0.0)
    xt = x0
    for i in range(layer_num):
        beta = math.log(theta / (i + 1) + 1.0)
        s = (1.0 - alpha) * (p @ xt) + alpha * x0
        xt = jnp.maximum((1.0 - beta) * s + beta * (s @ params["w_conv"][i]), 0.0)
    logits = xt @ params["w_cls"] + params["b_cls"]
    return logits, xt


# ---------------------------------------------------------------------------
# Main
# ---------------------------------------------------------------------------

if __name__ == "__main__":
    N = 16            # number of graph nodes
    IN_FEATS = 8
    HIDDEN = 32
    OUT_FEATS = 4
    LAYER_NUM = 2
    ALPHA = 0.1
    THETA = 0.5

    key = jax.random.PRNGKey(0)
    k_x, k_win, k_bin, k_wc0, k_wc1, k_wcls, k_bcls = jax.random.split(key, 7)

    # node features
    x = jax.random.normal(k_x, (N, IN_FEATS), jnp.float32)

    # deterministic ring graph (bidirectional): edge_index shape (2, 2N)
    idx = jnp.arange(N)
    src = jnp.concatenate([idx, (idx + 1) % N])
    dst = jnp.concatenate([(idx + 1) % N, idx])
    edge_index = jnp.stack([src, dst], axis=0).astype(jnp.int32)

    # deterministic parameters (weights stored pre-transposed: (in, out))
    params = {
        "w_in":  0.1 * jax.random.normal(k_win,  (IN_FEATS, HIDDEN), jnp.float32),
        "b_in":  0.1 * jax.random.normal(k_bin,  (1, HIDDEN), jnp.float32),
        "w_conv": [
            0.1 * jax.random.normal(k_wc0, (HIDDEN, HIDDEN), jnp.float32),
            0.1 * jax.random.normal(k_wc1, (HIDDEN, HIDDEN), jnp.float32),
        ],
        "w_cls": 0.1 * jax.random.normal(k_wcls, (HIDDEN, OUT_FEATS), jnp.float32),
        "b_cls": 0.1 * jax.random.normal(k_bcls, (1, OUT_FEATS), jnp.float32),
    }

    # one-time graph normalization + padding/casting/folding (hoisted)
    p = gcn_norm_dense(edge_index, N)
    prep = prepare_gcn2(p, params, ALPHA, THETA, LAYER_NUM)

    logits, aux = gcn2_forward(x, prep, block_m=_BLOCK_M)
    jax.block_until_ready(logits)
    jax.block_until_ready(aux["embedding"])
    jax.block_until_ready(aux["soft_label"])
    jax.block_until_ready(aux["hard_label"])

    # shape checks
    assert logits.shape == (N, OUT_FEATS)
    assert aux["embedding"].shape == (N, HIDDEN)
    assert aux["soft_label"].shape == (N, OUT_FEATS)
    assert aux["hard_label"].shape == (N,)
    # softmax rows sum to 1
    assert bool(jnp.all(jnp.abs(jnp.sum(aux["soft_label"], axis=1) - 1.0) < 1e-5))
    # hard label consistent with soft label
    assert bool(jnp.all(aux["hard_label"] == jnp.argmax(aux["soft_label"], axis=1)))
    # sanity check vs pure-f32 reference (bf16 MXU operands -> loose tolerance)
    ref_logits, ref_emb = gcn2_reference(x, p, params, ALPHA, THETA, LAYER_NUM)
    assert bool(jnp.allclose(logits, ref_logits, atol=5e-2, rtol=5e-2))
    assert bool(jnp.allclose(aux["embedding"], ref_emb, atol=5e-2, rtol=5e-2))

    print("KERNEL_OK")
</pallas_src>

<mosaic_0001>
module attributes {stable_mosaic.version = 11 : i64} {
  func.func @_init_proj_kernel(%arg0: i32, %arg1: memref<256x8xf32, #tpu.memory_space<vmem>>, %arg2: memref<8x128xbf16, #tpu.memory_space<vmem>>, %arg3: memref<1x128xf32, #tpu.memory_space<vmem>>, %arg4: memref<256x128xf32, #tpu.memory_space<vmem>>) attributes {dimension_semantics = [#tpu.dimension_semantics<parallel>], iteration_bounds = array<i64: 1>, scalar_prefetch = 0 : i64, scratch_operands = 0 : i64, tpu.core_type = #tpu.core_type<tc>, window_params = [{transform_indices = @transform_0, window_bounds = array<i64: 256, 8>}, {pipeline_mode = #tpu.pipeline_mode<synchronous>, transform_indices = @transform_1, window_bounds = array<i64: 8, 128>}, {pipeline_mode = #tpu.pipeline_mode<synchronous>, transform_indices = @transform_2, window_bounds = array<i64: 1, 128>}, {transform_indices = @transform_3, window_bounds = array<i64: 256, 128>}]} {
    %c0 = arith.constant 0 : index
    %c0_0 = arith.constant 0 : index
    %0 = vector.load %arg1[%c0, %c0_0] : memref<256x8xf32, #tpu.memory_space<vmem>>, vector<256x8xf32>
    %1 = arith.truncf %0 : vector<256x8xf32> to vector<256x8xbf16>
    %c0_1 = arith.constant 0 : index
    %c0_2 = arith.constant 0 : index
    %2 = vector.load %arg2[%c0_1, %c0_2] : memref<8x128xbf16, #tpu.memory_space<vmem>>, vector<8x128xbf16>
    %cst = arith.constant dense<0.000000e+00> : vector<256x128xf32>
    %3 = tpu.matmul %1, %2, %cst {dimension_numbers = #tpu.dot_dimension_numbers<[1], [0], [0], [1], [0, 0, 1, 1], [], []>} : vector<256x8xbf16>, vector<8x128xbf16>, vector<256x128xf32> -> vector<256x128xf32>
    %c0_3 = arith.constant 0 : index
    %c0_4 = arith.constant 0 : index
    %4 = vector.load %arg3[%c0_3, %c0_4] : memref<1x128xf32, #tpu.memory_space<vmem>>, vector<1x128xf32>
    %5 = vector.broadcast %4 : vector<1x128xf32> to vector<256x128xf32>
    %6 = arith.addf %3, %5 : vector<256x128xf32>
    %cst_5 = arith.constant 0.000000e+00 : f32
    %7 = vector.broadcast %cst_5 : f32 to vector<256x128xf32>
    %8 = arith.maximumf %6, %7 : vector<256x128xf32>
    %c0_6 = arith.constant 0 : index
    %c0_7 = arith.constant 0 : index
    %9 = vector.load %arg4[%c0_6, %c0_7] : memref<256x128xf32, #tpu.memory_space<vmem>>, vector<256x128xf32>
    tpu.vector_store %arg4[%c0_6, %c0_7], %8 {strides = array<i32>} : memref<256x128xf32, #tpu.memory_space<vmem>>, vector<256x128xf32>,
    return
  }
  func.func @transform_0(%arg0: i32) -> (i32, i32) {
    %c0_i32 = arith.constant 0 : i32
    %c0_i32_0 = arith.constant 0 : i32
    return %arg0, %c0_i32 : i32, i32
  }
  func.func @transform_1(%arg0: i32) -> (i32, i32) {
    %c0_i32 = arith.constant 0 : i32
    %c0_i32_0 = arith.constant 0 : i32
    %c0_i32_1 = arith.constant 0 : i32
    return %c0_i32, %c0_i32_0 : i32, i32
  }
  func.func @transform_2(%arg0: i32) -> (i32, i32) {
    %c0_i32 = arith.constant 0 : i32
    %c0_i32_0 = arith.constant 0 : i32
    %c0_i32_1 = arith.constant 0 : i32
    return %c0_i32, %c0_i32_0 : i32, i32
  }
  func.func @transform_3(%arg0: i32) -> (i32, i32) {
    %c0_i32 = arith.constant 0 : i32
    %c0_i32_0 = arith.constant 0 : i32
    return %arg0, %c0_i32 : i32, i32
  }
}

module attributes {stable_mosaic.version = 11 : i64} {
  func.func @_gcn2_layer_kernel(%arg0: i32, %arg1: memref<256x256xbf16, #tpu.memory_space<vmem>>, %arg2: memref<256x128xbf16, #tpu.memory_space<vmem>>, %arg3: memref<256x128xf32, #tpu.memory_space<vmem>>, %arg4: memref<128x128xbf16, #tpu.memory_space<vmem>>, %arg5: memref<256x128xf32, #tpu.memory_space<vmem>>) attributes {dimension_semantics = [#tpu.dimension_semantics<parallel>], iteration_bounds = array<i64: 1>, scalar_prefetch = 0 : i64, scratch_operands = 0 : i64, tpu.core_type = #tpu.core_type<tc>, window_params = [{transform_indices = @transform_0, window_bounds = array<i64: 256, 256>}, {pipeline_mode = #tpu.pipeline_mode<synchronous>, transform_indices = @transform_1, window_bounds = array<i64: 256, 128>}, {transform_indices = @transform_2, window_bounds = array<i64: 256, 128>}, {pipeline_mode = #tpu.pipeline_mode<synchronous>, transform_indices = @transform_3, window_bounds = array<i64: 128, 128>}, {transform_indices = @transform_4, window_bounds = array<i64: 256, 128>}]} {
    %c0 = arith.constant 0 : index
    %c0_0 = arith.constant 0 : index
    %0 = vector.load %arg1[%c0, %c0_0] : memref<256x256xbf16, #tpu.memory_space<vmem>>, vector<256x256xbf16>
    %c0_1 = arith.constant 0 : index
    %c0_2 = arith.constant 0 : index
    %1 = vector.load %arg2[%c0_1, %c0_2] : memref<256x128xbf16, #tpu.memory_space<vmem>>, vector<256x128xbf16>
    %cst = arith.constant dense<0.000000e+00> : vector<256x128xf32>
    %2 = tpu.matmul %0, %1, %cst {dimension_numbers = #tpu.dot_dimension_numbers<[1], [0], [0], [1], [0, 0, 1, 1], [], []>} : vector<256x256xbf16>, vector<256x128xbf16>, vector<256x128xf32> -> vector<256x128xf32>
    %c0_3 = arith.constant 0 : index
    %c0_4 = arith.constant 0 : index
    %3 = vector.load %arg3[%c0_3, %c0_4] : memref<256x128xf32, #tpu.memory_space<vmem>>, vector<256x128xf32>
    %4 = arith.addf %2, %3 : vector<256x128xf32>
    %5 = arith.truncf %4 : vector<256x128xf32> to vector<256x128xbf16>
    %c0_5 = arith.constant 0 : index
    %c0_6 = arith.constant 0 : index
    %6 = vector.load %arg4[%c0_5, %c0_6] : memref<128x128xbf16, #tpu.memory_space<vmem>>, vector<128x128xbf16>
    %cst_7 = arith.constant dense<0.000000e+00> : vector<256x128xf32>
    %7 = tpu.matmul %5, %6, %cst_7 {dimension_numbers = #tpu.dot_dimension_numbers<[1], [0], [0], [1], [0, 0, 1, 1], [], []>} : vector<256x128xbf16>, vector<128x128xbf16>, vector<256x128xf32> -> vector<256x128xf32>
    %cst_8 = arith.constant 0.000000e+00 : f32
    %8 = vector.broadcast %cst_8 : f32 to vector<256x128xf32>
    %9 = arith.maximumf %7, %8 : vector<256x128xf32>
    %c0_9 = arith.constant 0 : index
    %c0_10 = arith.constant 0 : index
    %10 = vector.load %arg5[%c0_9, %c0_10] : memref<256x128xf32, #tpu.memory_space<vmem>>, vector<256x128xf32>
    tpu.vector_store %arg5[%c0_9, %c0_10], %9 {strides = array<i32>} : memref<256x128xf32, #tpu.memory_space<vmem>>, vector<256x128xf32>,
    return
  }
  func.func @transform_0(%arg0: i32) -> (i32, i32) {
    %c0_i32 = arith.constant 0 : i32
    %c0_i32_0 = arith.constant 0 : i32
    return %arg0, %c0_i32 : i32, i32
  }
  func.func @transform_1(%arg0: i32) -> (i32, i32) {
    %c0_i32 = arith.constant 0 : i32
    %c0_i32_0 = arith.constant 0 : i32
    %c0_i32_1 = arith.constant 0 : i32
    return %c0_i32, %c0_i32_0 : i32, i32
  }
  func.func @transform_2(%arg0: i32) -> (i32, i32) {
    %c0_i32 = arith.constant 0 : i32
    %c0_i32_0 = arith.constant 0 : i32
    return %arg0, %c0_i32 : i32, i32
  }
  func.func @transform_3(%arg0: i32) -> (i32, i32) {
    %c0_i32 = arith.constant 0 : i32
    %c0_i32_0 = arith.constant 0 : i32
    %c0_i32_1 = arith.constant 0 : i32
    return %c0_i32, %c0_i32_0 : i32, i32
  }
  func.func @transform_4(%arg0: i32) -> (i32, i32) {
    %c0_i32 = arith.constant 0 : i32
    %c0_i32_0 = arith.constant 0 : i32
    return %arg0, %c0_i32 : i32, i32
  }
}

</mosaic_0001>

<bundles_post_ra>
// kernel: gcn2_forward.3
= control target key start
LH: loop header
LB: loop body
LE: loop exit
PB: predicated region body
PF: predicated region fallthrough
CT: control target
= control target key end

     0   :  { %vm120_vm0 = vcmask 1043456   ;;  %vm71_vm1 = vcmask 64512   ;;  %s693_s1 = inlined_call_operand.vmem [shape: bf16[8,128], index: 1, kind: input, shape index: {}]   ;;  %s694_s0 = inlined_call_operand.vmem [shape: f32[256,8], index: 0, kind: input, shape index: {}]   ;;  %s695_s2 = inlined_call_operand.vmem [shape: f32[1,128], index: 2, kind: input, shape index: {}]   ;;  %s696_s3 = inlined_call_operand.vmem [shape: f32[256,128], index: 3, kind: output, shape index: {}]  }
   0x1   :  { %v63_v0 = vld [vmem:[%s693_s1] sm:$0xf]  ;;  %v16_v2 = vld [vmem:[%s694_s0 + $0x8] sm:$0xff]  ;;  %v17_v7 = vld [vmem:[%s694_s0 + $0x10] sm:$0xff] }
   0x2   :  { %v15_v1 = vld [vmem:[%s694_s0] sm:$0xff]  ;;  %423 = vmatprep.subr.msk.bf16.mxu0 %vm120_vm0, %v63_v0  ;;  %424 = vmatprep.subr.msk.bf16.mxu1 %vm120_vm0, %v63_v0  ;;  %v122_v3 = vsel %vm120_vm0, %v63_v0, 0  ;;  %v32_v6 = vld [vmem:[%s694_s0 + $0x88] sm:$0xff]  ;;  %v18_v9 = vld [vmem:[%s694_s0 + $0x18] sm:$0xff] }
   0x3   :  { %v47_v4 = vpack.c.bf16 %v16_v2, %v15_v1  ;;  %v31_v5 = vld [vmem:[%s694_s0 + $0x80] sm:$0xff]  ;;  %388 = vmatpush3.bf16.msra.mxu0 %v122_v3  ;;  %422 = vmatpush3.bf16.msra.mxu1 %v122_v3  ;;  %v33_v10 = vld [vmem:[%s694_s0 + $0x90] sm:$0xff]  ;;  %v34_v11 = vld [vmem:[%s694_s0 + $0x98] sm:$0xff]  ;;  %v48_v12 = vpack.c.bf16 %v18_v9, %v17_v7 }
   0x4   :  { %v55_v8 = vpack.c.bf16 %v32_v6, %v31_v5  ;;  %v56_v13 = vpack.c.bf16 %v34_v11, %v33_v10  ;;  %v19_v14 = vld [vmem:[%s694_s0 + $0x20] sm:$0xff]  ;;  %v20_v15 = vld [vmem:[%s694_s0 + $0x28] sm:$0xff]  ;;  %v21_v20 = vld [vmem:[%s694_s0 + $0x30] sm:$0xff] }
   0x5   :  { %389 = vmatprep.mubr.msk.bf16.mxu0 %vm71_vm1, %v47_v4  ;;  %v35_v16 = vld [vmem:[%s694_s0 + $0xa0] sm:$0xff]  ;;  %v49_v17 = vpack.c.bf16 %v20_v15, %v19_v14  ;;  %v36_v18 = vld [vmem:[%s694_s0 + $0xa8] sm:$0xff]  ;;  %v22_v21 = vld [vmem:[%s694_s0 + $0x38] sm:$0xff] }
   0x6   :  { %405 = vmatprep.mubr.msk.bf16.mxu1 %vm71_vm1, %v55_v8  ;;  %390 = vmatmul.mubr.msk.bf16.vlgmr.msra.gmra.mrb[0].mxu0 %vm71_vm1, %v48_v12  ;;  %v57_v19 = vpack.c.bf16 %v36_v18, %v35_v16  ;;  %v37_v22 = vld [vmem:[%s694_s0 + $0xb0] sm:$0xff]  ;;  %v38_v23 = vld [vmem:[%s694_s0 + $0xb8] sm:$0xff]  ;;  %v23_v24 = vld [vmem:[%s694_s0 + $0x40] sm:$0xff]  ;;  %v50_v28 = vpack.c.bf16 %v22_v21, %v21_v20 }
   0x7   :  { %406 = vmatmul.mubr.msk.bf16.vlgmr.msra.gmra.mrb[0].mxu1 %vm71_vm1, %v56_v13  ;;  %393 = vmatprep.mubr.msk.bf16.mxu0 %vm71_vm1, %v49_v17  ;;  %v24_v25 = vld [vmem:[%s694_s0 + $0x48] sm:$0xff]  ;;  %v39_v26 = vld [vmem:[%s694_s0 + $0xc0] sm:$0xff]  ;;  %v58_v29 = vpack.c.bf16 %v38_v23, %v37_v22  ;;  %v25_v32 = vld [vmem:[%s694_s0 + $0x50] sm:$0xff] }
   0x8   :  { %409 = vmatprep.mubr.msk.bf16.mxu1 %vm71_vm1, %v57_v19  ;;  %v40_v27 = vld [vmem:[%s694_s0 + $0xc8] sm:$0xff]  ;;  %v51_v30 = vpack.c.bf16 %v24_v25, %v23_v24  ;;  %v26_v33 = vld [vmem:[%s694_s0 + $0x58] sm:$0xff]  ;;  %v41_v34 = vld [vmem:[%s694_s0 + $0xd0] sm:$0xff] }
   0x9   :  { %v59_v31 = vpack.c.bf16 %v40_v27, %v39_v26  ;;  %v42_v35 = vld [vmem:[%s694_s0 + $0xd8] sm:$0xff]  ;;  %v27_v36 = vld [vmem:[%s694_s0 + $0x60] sm:$0xff]  ;;  %v28_v37 = vld [vmem:[%s694_s0 + $0x68] sm:$0xff]  ;;  %v52_v40 = vpack.c.bf16 %v26_v33, %v25_v32 }
   0xa   :  { %v43_v38 = vld [vmem:[%s694_s0 + $0xe0] sm:$0xff]  ;;  %v44_v39 = vld [vmem:[%s694_s0 + $0xe8] sm:$0xff]  ;;  %v60_v41 = vpack.c.bf16 %v42_v35, %v41_v34  ;;  %v53_v42 = vpack.c.bf16 %v28_v37, %v27_v36  ;;  %v29_v44 = vld [vmem:[%s694_s0 + $0x70] sm:$0xff] }
   0xb   :  { %v61_v43 = vpack.c.bf16 %v44_v39, %v43_v38  ;;  %v30_v45 = vld [vmem:[%s694_s0 + $0x78] sm:$0xff]  ;;  %v45_v46 = vld [vmem:[%s694_s0 + $0xf0] sm:$0xff]  ;;  %v563_v50 = vld [vmem:[%s695_s2] ss:$0 sm:$0xff] }
   0xc   :  { %v46_v47 = vld [vmem:[%s694_s0 + $0xf8] sm:$0xff]  ;;  %v54_v48 = vpack.c.bf16 %v30_v45, %v29_v44 }
   0xd   :  { %v62_v49 = vpack.c.bf16 %v46_v47, %v45_v46 }
   0xe   :  { %394 = vmatmul.mubr.msk.bf16.gmra.mrb[4].mxu0 %vm71_vm1, %v50_v28 }
   0xf   :  { %410 = vmatmul.mubr.msk.bf16.gmra.mrb[4].mxu1 %vm71_vm1, %v58_v29  ;;  %397 = vmatprep.mubr.msk.bf16.mxu0 %vm71_vm1, %v51_v30 }
  0x10   :  { %413 = vmatprep.mubr.msk.bf16.mxu1 %vm71_vm1, %v59_v31 }
  0x16   :  { %398 = vmatmul.mubr.msk.bf16.gmra.mrb[8].mxu0 %vm71_vm1, %v52_v40 }
  0x17   :  { %414 = vmatmul.mubr.msk.bf16.gmra.mrb[8].mxu1 %vm71_vm1, %v60_v41  ;;  %401 = vmatprep.mubr.msk.bf16.mxu0 %vm71_vm1, %v53_v42 }
  0x18   :  { %417 = vmatprep.mubr.msk.bf16.mxu1 %vm71_vm1, %v61_v43 }
  0x1e   :  { %402 = vmatmul.mubr.msk.bf16.gmra.mrb[12].mxu0 %vm71_vm1, %v54_v48 }
  0x1f   :  { %418 = vmatmul.mubr.msk.bf16.gmra.mrb[12].mxu1 %vm71_vm1, %v62_v49 }
  0xd9   :  { %v391_v51 = vpop.f32.mrb[0].mxu0 }
  0xda   :  { %v407_v52 = vpop.f32.mrb[0].mxu1  ;;  %v167_v53 = vadd.f32 %v391_v51, %v563_v50  ;;  %v158_v55 = vpop.f32.mrb[1].mxu0 }
  0xdb   :  { %v231_v54 = vadd.f32 %v407_v52, %v563_v50  ;;  %v222_v56 = vpop.f32.mrb[1].mxu1  ;;  %v159_v57 = vadd.f32 %v563_v50, %v158_v55  ;;  %v392_v59 = vpop.f32.mrb[2].mxu0 }
  0xdc   :  { %v223_v58 = vadd.f32 %v563_v50, %v222_v56  ;;  %v408_v60 = vpop.f32.mrb[2].mxu1  ;;  %v287_v61 = vmax.f32 %v167_v53, 0.0  ;;  %v170_v63 = vadd.f32 %v392_v59, %v563_v50  ;;  %v161_v1 = vpop.f32.mrb[3].mxu0 }
  0xdd   :  { %v303_v62 = vmax.f32 %v231_v54, 0.0  ;;  %v234_v0 = vadd.f32 %v408_v60, %v563_v50  ;;  %v225_v2 = vpop.f32.mrb[3].mxu1  ;;  %v285_v3 = vmax.f32 %v159_v57, 0.0  ;;  %v162_v5 = vadd.f32 %v563_v50, %v161_v1 }
  0xde   :  { %v301_v4 = vmax.f32 %v223_v58, 0.0  ;;  %v226_v6 = vadd.f32 %v563_v50, %v225_v2  ;;  %319 = vst [vmem:[%s696_s3 + $0x10] sm:$0xff] %v287_v61  ;;  %v288_v7 = vmax.f32 %v170_v63, 0.0 }
  0xdf   :  { %335 = vst [vmem:[%s696_s3 + $0x90] sm:$0xff] %v303_v62  ;;  %v304_v8 = vmax.f32 %v234_v0, 0.0  ;;  %317 = vst [vmem:[%s696_s3] sm:$0xff] %v285_v3  ;;  %v286_v9 = vmax.f32 %v162_v5, 0.0 }
  0xe0   :  { %333 = vst [vmem:[%s696_s3 + $0x80] sm:$0xff] %v301_v4  ;;  %v302_v10 = vmax.f32 %v226_v6, 0.0  ;;  %320 = vst [vmem:[%s696_s3 + $0x18] sm:$0xff] %v288_v7 }
  0xe1   :  { %336 = vst [vmem:[%s696_s3 + $0x98] sm:$0xff] %v304_v8  ;;  %318 = vst [vmem:[%s696_s3 + $0x8] sm:$0xff] %v286_v9  ;;  %v395_v11 = vpop.f32.mrb[4].mxu0 }
  0xe2   :  { %334 = vst [vmem:[%s696_s3 + $0x88] sm:$0xff] %v302_v10  ;;  %v411_v12 = vpop.f32.mrb[4].mxu1  ;;  %v183_v13 = vadd.f32 %v395_v11, %v563_v50  ;;  %v174_v15 = vpop.f32.mrb[5].mxu0 }
  0xe3   :  { %v247_v14 = vadd.f32 %v411_v12, %v563_v50  ;;  %v238_v16 = vpop.f32.mrb[5].mxu1  ;;  %v175_v17 = vadd.f32 %v563_v50, %v174_v15  ;;  %v396_v19 = vpop.f32.mrb[6].mxu0 }
  0xe4   :  { %v239_v18 = vadd.f32 %v563_v50, %v238_v16  ;;  %v412_v20 = vpop.f32.mrb[6].mxu1  ;;  %v291_v21 = vmax.f32 %v183_v13, 0.0  ;;  %v186_v23 = vadd.f32 %v396_v19, %v563_v50  ;;  %v177_v25 = vpop.f32.mrb[7].mxu0 }
  0xe5   :  { %v307_v22 = vmax.f32 %v247_v14, 0.0  ;;  %v250_v24 = vadd.f32 %v412_v20, %v563_v50  ;;  %v241_v26 = vpop.f32.mrb[7].mxu1  ;;  %v289_v27 = vmax.f32 %v175_v17, 0.0  ;;  %v178_v29 = vadd.f32 %v563_v50, %v177_v25 }
  0xe6   :  { %v305_v28 = vmax.f32 %v239_v18, 0.0  ;;  %v242_v30 = vadd.f32 %v563_v50, %v241_v26  ;;  %323 = vst [vmem:[%s696_s3 + $0x30] sm:$0xff] %v291_v21  ;;  %v292_v31 = vmax.f32 %v186_v23, 0.0 }
  0xe7   :  { %339 = vst [vmem:[%s696_s3 + $0xb0] sm:$0xff] %v307_v22  ;;  %v308_v32 = vmax.f32 %v250_v24, 0.0  ;;  %321 = vst [vmem:[%s696_s3 + $0x20] sm:$0xff] %v289_v27  ;;  %v290_v33 = vmax.f32 %v178_v29, 0.0 }
  0xe8   :  { %337 = vst [vmem:[%s696_s3 + $0xa0] sm:$0xff] %v305_v28  ;;  %v306_v34 = vmax.f32 %v242_v30, 0.0  ;;  %324 = vst [vmem:[%s696_s3 + $0x38] sm:$0xff] %v292_v31 }
  0xe9   :  { %340 = vst [vmem:[%s696_s3 + $0xb8] sm:$0xff] %v308_v32  ;;  %322 = vst [vmem:[%s696_s3 + $0x28] sm:$0xff] %v290_v33  ;;  %v399_v35 = vpop.f32.mrb[8].mxu0 }
  0xea   :  { %338 = vst [vmem:[%s696_s3 + $0xa8] sm:$0xff] %v306_v34  ;;  %v415_v36 = vpop.f32.mrb[8].mxu1  ;;  %v199_v37 = vadd.f32 %v399_v35, %v563_v50  ;;  %v190_v39 = vpop.f32.mrb[9].mxu0 }
  0xeb   :  { %v263_v38 = vadd.f32 %v415_v36, %v563_v50  ;;  %v254_v40 = vpop.f32.mrb[9].mxu1  ;;  %v191_v41 = vadd.f32 %v563_v50, %v190_v39  ;;  %v400_v43 = vpop.f32.mrb[10].mxu0 }
  0xec   :  { %v255_v42 = vadd.f32 %v563_v50, %v254_v40  ;;  %v416_v44 = vpop.f32.mrb[10].mxu1  ;;  %v295_v45 = vmax.f32 %v199_v37, 0.0  ;;  %v202_v47 = vadd.f32 %v400_v43, %v563_v50  ;;  %v193_v49 = vpop.f32.mrb[11].mxu0 }
  0xed   :  { %v311_v46 = vmax.f32 %v263_v38, 0.0  ;;  %v266_v48 = vadd.f32 %v416_v44, %v563_v50  ;;  %v257_v51 = vpop.f32.mrb[11].mxu1  ;;  %v293_v52 = vmax.f32 %v191_v41, 0.0  ;;  %v194_v54 = vadd.f32 %v563_v50, %v193_v49 }
  0xee   :  { %v309_v53 = vmax.f32 %v255_v42, 0.0  ;;  %v258_v55 = vadd.f32 %v563_v50, %v257_v51  ;;  %327 = vst [vmem:[%s696_s3 + $0x50] sm:$0xff] %v295_v45  ;;  %v296_v56 = vmax.f32 %v202_v47, 0.0 }
  0xef   :  { %343 = vst [vmem:[%s696_s3 + $0xd0] sm:$0xff] %v311_v46  ;;  %v312_v57 = vmax.f32 %v266_v48, 0.0  ;;  %325 = vst [vmem:[%s696_s3 + $0x40] sm:$0xff] %v293_v52  ;;  %v294_v58 = vmax.f32 %v194_v54, 0.0 }
  0xf0   :  { %341 = vst [vmem:[%s696_s3 + $0xc0] sm:$0xff] %v309_v53  ;;  %v310_v59 = vmax.f32 %v258_v55, 0.0  ;;  %328 = vst [vmem:[%s696_s3 + $0x58] sm:$0xff] %v296_v56 }
  0xf1   :  { %344 = vst [vmem:[%s696_s3 + $0xd8] sm:$0xff] %v312_v57  ;;  %326 = vst [vmem:[%s696_s3 + $0x48] sm:$0xff] %v294_v58  ;;  %v403_v60 = vpop.f32.mrb[12].mxu0 }
  0xf2   :  { %342 = vst [vmem:[%s696_s3 + $0xc8] sm:$0xff] %v310_v59  ;;  %v419_v61 = vpop.f32.mrb[12].mxu1  ;;  %v215_v62 = vadd.f32 %v403_v60, %v563_v50  ;;  %v206_v0 = vpop.f32.mrb[13].mxu0 }
  0xf3   :  { %v279_v63 = vadd.f32 %v419_v61, %v563_v50  ;;  %v270_v1 = vpop.f32.mrb[13].mxu1  ;;  %v207_v2 = vadd.f32 %v563_v50, %v206_v0  ;;  %v404_v4 = vpop.f32.mrb[14].mxu0 }
  0xf4   :  { %v271_v3 = vadd.f32 %v563_v50, %v270_v1  ;;  %v420_v5 = vpop.f32.mrb[14].mxu1  ;;  %v299_v6 = vmax.f32 %v215_v62, 0.0  ;;  %v218_v8 = vadd.f32 %v404_v4, %v563_v50  ;;  %v209_v10 = vpop.f32.mrb[15].mxu0 }
  0xf5   :  { %v315_v7 = vmax.f32 %v279_v63, 0.0  ;;  %v282_v9 = vadd.f32 %v420_v5, %v563_v50  ;;  %v273_v11 = vpop.f32.mrb[15].mxu1  ;;  %v297_v12 = vmax.f32 %v207_v2, 0.0  ;;  %v210_v14 = vadd.f32 %v563_v50, %v209_v10 }
  0xf6   :  { %v313_v13 = vmax.f32 %v271_v3, 0.0  ;;  %v274_v15 = vadd.f32 %v563_v50, %v273_v11  ;;  %331 = vst [vmem:[%s696_s3 + $0x70] sm:$0xff] %v299_v6  ;;  %v300_v16 = vmax.f32 %v218_v8, 0.0 }
  0xf7   :  { %347 = vst [vmem:[%s696_s3 + $0xf0] sm:$0xff] %v315_v7  ;;  %v316_v17 = vmax.f32 %v282_v9, 0.0  ;;  %329 = vst [vmem:[%s696_s3 + $0x60] sm:$0xff] %v297_v12  ;;  %v298_v18 = vmax.f32 %v210_v14, 0.0 }
  0xf8   :  { %345 = vst [vmem:[%s696_s3 + $0xe0] sm:$0xff] %v313_v13  ;;  %v314_v50 = vmax.f32 %v274_v15, 0.0  ;;  %332 = vst [vmem:[%s696_s3 + $0x78] sm:$0xff] %v300_v16 }
  0xf9   :  { %348 = vst [vmem:[%s696_s3 + $0xf8] sm:$0xff] %v316_v17  ;;  %330 = vst [vmem:[%s696_s3 + $0x68] sm:$0xff] %v298_v18 }
  0xfa   :  { %346 = vst [vmem:[%s696_s3 + $0xe8] sm:$0xff] %v314_v50 }

// kernel: gcn2_forward.4
= control target key start
LH: loop header
LB: loop body
LE: loop exit
PB: predicated region body
PF: predicated region fallthrough
CT: control target
= control target key end

     0   :  { %s1589_s1 = inlined_call_operand.vmem [shape: bf16[256,128], index: 1, kind: input, shape index: {}]   ;;  %s1590_s0 = inlined_call_operand.vmem [shape: bf16[256,256], index: 0, kind: input, shape index: {}]   ;;  %s1591_s3 = inlined_call_operand.vmem [shape: bf16[128,128], index: 3, kind: input, shape index: {}]   ;;  %s1592_s2 = inlined_call_operand.vmem [shape: f32[256,128], index: 2, kind: input, shape index: {}]   ;;  %s1593_s4 = inlined_call_operand.vmem [shape: f32[256,128], index: 4, kind: output, shape index: {}]  }
   0x1   :  { %v1096_v0 = vld [vmem:[%s1589_s1 + $0x40] sm:$0xff]   ;;  %v1098_v2 = vld [vmem:[%s1589_s1 + $0x48] sm:$0xff]   ;;  %v1100_v4 = vld [vmem:[%s1589_s1 + $0x50] sm:$0xff]  }
   0x2   :  { %v1097_v1 = vld [vmem:[%s1589_s1] sm:$0xff]   ;;  %896 = vmatprep.subr.bf16.mxu0 %v1096_v0  ;;  %1080 = vmatprep.subr.bf16.mxu1 %v1096_v0  ;;  %v1099_v3 = vld [vmem:[%s1589_s1 + $0x8] sm:$0xff]   ;;  %v1101_v5 = vld [vmem:[%s1589_s1 + $0x10] sm:$0xff]  }
   0x3   :  { %897 = vmatpush3.bf16.msra.mxu0 %v1097_v1  ;;  %1088 = vmatpush3.bf16.msra.mxu1 %v1097_v1  ;;  %v1102_v6 = vld [vmem:[%s1589_s1 + $0x58] sm:$0xff]   ;;  %v1104_v8 = vld [vmem:[%s1589_s1 + $0x60] sm:$0xff]   ;;  %v1106_v10 = vld [vmem:[%s1589_s1 + $0x68] sm:$0xff]  }
   0x4   :  { %898 = vmatprep.subr.bf16.mxu0 %v1098_v2  ;;  %1081 = vmatprep.subr.bf16.mxu1 %v1098_v2  ;;  %v1103_v7 = vld [vmem:[%s1589_s1 + $0x18] sm:$0xff]   ;;  %v1105_v9 = vld [vmem:[%s1589_s1 + $0x20] sm:$0xff]   ;;  %v1107_v12 = vld [vmem:[%s1589_s1 + $0x28] sm:$0xff]  }
   0x5   :  { %v1114_v11 = vld [vmem:[%s1590_s0 + $0x4] ss:$8 sps:$4 sm:$0xff]   ;;  %v1108_v13 = vld [vmem:[%s1589_s1 + $0x70] sm:$0xff]   ;;  %v1110_v15 = vld [vmem:[%s1589_s1 + $0x78] sm:$0xff]  }
   0x6   :  { %402 = vmatprep.mubr.bf16.mxu0 %v1114_v11  ;;  %v1109_v14 = vld [vmem:[%s1589_s1 + $0x30] sm:$0xff]   ;;  %v1111_v16 = vld [vmem:[%s1589_s1 + $0x38] sm:$0xff]   ;;  %v1112_v17 = vld [vmem:[%s1590_s0] ss:$8 sps:$4 sm:$0xff]  }
   0x7   :  { %899 = vmatpush3.bf16.msra.mxu0 %v1099_v3  ;;  %1089 = vmatpush3.bf16.msra.mxu1 %v1099_v3  ;;  %v1144_v18 = vld [vmem:[%s1590_s0 + $0xc4] ss:$8 sps:$4 sm:$0xff]   ;;  %v1115_v19 = vld [vmem:[%s1590_s0 + $0x14] ss:$8 sps:$4 sm:$0xff]   ;;  %v1142_v20 = vld [vmem:[%s1590_s0 + $0xc0] ss:$8 sps:$4 sm:$0xff]  }
   0x8   :  { %900 = vmatprep.subr.bf16.mxu0 %v1100_v4  ;;  %1082 = vmatprep.subr.bf16.mxu1 %v1100_v4  ;;  %v1148_v21 = vld [vmem:[%s1590_s0 + $0xd4] ss:$8 sps:$4 sm:$0xff]   ;;  %v1117_v22 = vld [vmem:[%s1590_s0 + $0x10] ss:$8 sps:$4 sm:$0xff]   ;;  %v1118_v23 = vld [vmem:[%s1590_s0 + $0x24] ss:$8 sps:$4 sm:$0xff]  }
   0x9   :  { %498 = vmatprep.mubr.bf16.mxu1 %v1144_v18  ;;  %v1150_v24 = vld [vmem:[%s1590_s0 + $0xd0] ss:$8 sps:$4 sm:$0xff]   ;;  %v1160_v25 = vld [vmem:[%s1591_s3] sm:$0xff]   ;;  %v1161_v26 = vld [vmem:[%s1591_s3 + $0x8] sm:$0xff]  }
   0xa   :  { %v1154_v27 = vld [vmem:[%s1590_s0 + $0xe4] ss:$8 sps:$4 sm:$0xff]   ;;  %v1162_v28 = vld [vmem:[%s1591_s3 + $0x10] sm:$0xff]   ;;  %v1120_v29 = vld [vmem:[%s1590_s0 + $0x20] ss:$8 sps:$4 sm:$0xff]  }
   0xb   :  { %901 = vmatpush3.bf16.msra.mxu0 %v1101_v5  ;;  %1090 = vmatpush3.bf16.msra.mxu1 %v1101_v5  ;;  %v1163_v30 = vld [vmem:[%s1591_s3 + $0x18] sm:$0xff]   ;;  %v1156_v32 = vld [vmem:[%s1590_s0 + $0xe0] ss:$8 sps:$4 sm:$0xff]   ;;  %v1124_v35 = vld [vmem:[%s1590_s0 + $0x44] ss:$8 sps:$4 sm:$0xff]  }
   0xc   :  { %902 = vmatprep.subr.bf16.mxu0 %v1102_v6  ;;  %1083 = vmatprep.subr.bf16.mxu1 %v1102_v6  ;;  %v1121_v31 = vld [vmem:[%s1590_s0 + $0x34] ss:$8 sps:$4 sm:$0xff]   ;;  %v1123_v34 = vld [vmem:[%s1590_s0 + $0x30] ss:$8 sps:$4 sm:$0xff]   ;;  %v1126_v37 = vld [vmem:[%s1590_s0 + $0x40] ss:$8 sps:$4 sm:$0xff]  }
   0xd   :  { %v1157_v33 = vld [vmem:[%s1590_s0 + $0xf4] ss:$8 sps:$4 sm:$0xff]   ;;  %v1159_v36 = vld [vmem:[%s1590_s0 + $0xf0] ss:$8 sps:$4 sm:$0xff]   ;;  %v1130_v40 = vld [vmem:[%s1590_s0 + $0x64] ss:$8 sps:$4 sm:$0xff]  }
   0xe   :  { %v1127_v38 = vld [vmem:[%s1590_s0 + $0x54] ss:$8 sps:$4 sm:$0xff]   ;;  %v1129_v39 = vld [vmem:[%s1590_s0 + $0x50] ss:$8 sps:$4 sm:$0xff]   ;;  %v1132_v41 = vld [vmem:[%s1590_s0 + $0x60] ss:$8 sps:$4 sm:$0xff]  }
   0xf   :  { %903 = vmatpush3.bf16.msra.mxu0 %v1103_v7  ;;  %1091 = vmatpush3.bf16.msra.mxu1 %v1103_v7  ;;  %v1133_v42 = vld [vmem:[%s1590_s0 + $0x74] ss:$8 sps:$4 sm:$0xff]   ;;  %v1135_v43 = vld [vmem:[%s1590_s0 + $0x70] ss:$8 sps:$4 sm:$0xff]   ;;  %v1136_v44 = vld [vmem:[%s1590_s0 + $0x84] ss:$8 sps:$4 sm:$0xff]  }
  0x10   :  { %904 = vmatprep.subr.bf16.mxu0 %v1104_v8  ;;  %1084 = vmatprep.subr.bf16.mxu1 %v1104_v8  ;;  %v1138_v45 = vld [vmem:[%s1590_s0 + $0x80] ss:$8 sps:$4 sm:$0xff]   ;;  %v1139_v46 = vld [vmem:[%s1590_s0 + $0x94] ss:$8 sps:$4 sm:$0xff]   ;;  %v1141_v47 = vld [vmem:[%s1590_s0 + $0x90] ss:$8 sps:$4 sm:$0xff]  }
  0x11   :  { %v1145_v48 = vld [vmem:[%s1590_s0 + $0xa4] ss:$8 sps:$4 sm:$0xff]   ;;  %v1147_v49 = vld [vmem:[%s1590_s0 + $0xa0] ss:$8 sps:$4 sm:$0xff]   ;;  %v1151_v50 = vld [vmem:[%s1590_s0 + $0xb4] ss:$8 sps:$4 sm:$0xff]  }
  0x12   :  { %v1164_v51 = vld [vmem:[%s1591_s3 + $0x20] sm:$0xff]   ;;  %v1153_v52 = vld [vmem:[%s1590_s0 + $0xb0] ss:$8 sps:$4 sm:$0xff]   ;;  %v1165_v53 = vld [vmem:[%s1591_s3 + $0x28] sm:$0xff]  }
  0x13   :  { %905 = vmatpush3.bf16.msra.mxu0 %v1105_v9  ;;  %1092 = vmatpush3.bf16.msra.mxu1 %v1105_v9  ;;  %v1166_v54 = vld [vmem:[%s1591_s3 + $0x30] sm:$0xff]   ;;  %v1167_v55 = vld [vmem:[%s1591_s3 + $0x38] sm:$0xff]   ;;  %v106_v61 = vld [vmem:[%s1592_s2 + $0xc0] sm:$0xff] }
  0x14   :  { %906 = vmatprep.subr.bf16.mxu0 %v1106_v10  ;;  %1085 = vmatprep.subr.bf16.mxu1 %v1106_v10  ;;  %v82_v63 = vld [vmem:[%s1592_s2] sm:$0xff]  ;;  %v83_v0 = vld [vmem:[%s1592_s2 + $0x8] sm:$0xff] }
  0x15   :  { %v107_v5 = vld [vmem:[%s1592_s2 + $0xc8] sm:$0xff] }
  0x17   :  { %907 = vmatpush3.bf16.msra.mxu0 %v1107_v12  ;;  %1093 = vmatpush3.bf16.msra.mxu1 %v1107_v12 }
  0x18   :  { %908 = vmatprep.subr.bf16.mxu0 %v1108_v13  ;;  %1086 = vmatprep.subr.bf16.mxu1 %v1108_v13 }
  0x1b   :  { %909 = vmatpush3.bf16.msra.mxu0 %v1109_v14  ;;  %1094 = vmatpush3.bf16.msra.mxu1 %v1109_v14 }
  0x1c   :  { %910 = vmatprep.subr.bf16.mxu0 %v1110_v15  ;;  %1087 = vmatprep.subr.bf16.mxu1 %v1110_v15 }
  0x1f   :  { %911 = vmatpush3.bf16.msra.mxu0 %v1111_v16  ;;  %1095 = vmatpush3.bf16.msra.mxu1 %v1111_v16 }
  0x20   :  { %1032 = vmatprep.subr.bf16.mxu1 %v1160_v25 }
  0x22   :  { %403 = vmatmul.mubr.bf16.vlgmr.msra.gmra.mrb[0].mxu0 %v1112_v17  ;;  %499 = vmatmul.mubr.bf16.vlgmr.msra.gmra.mrb[0].mxu1 %v1142_v20 }
  0x23   :  { %410 = vmatprep.mubr.bf16.mxu0 %v1115_v19  ;;  %506 = vmatprep.mubr.bf16.mxu1 %v1148_v21  ;;  %v108_v19 = vld [vmem:[%s1592_s2 + $0xd0] sm:$0xff] }
  0x24   :  { %1033 = vmatpush3.bf16.msra.mxu1 %v1160_v25  ;;  %v84_v21 = vld [vmem:[%s1592_s2 + $0x10] sm:$0xff] }
  0x25   :  { %1034 = vmatprep.subr.bf16.mxu1 %v1161_v26 }
  0x28   :  { %1035 = vmatpush3.bf16.msra.mxu1 %v1161_v26 }
  0x29   :  { %1036 = vmatprep.subr.bf16.mxu1 %v1162_v28 }
  0x2a   :  { %411 = vmatmul.mubr.bf16.gmra.mrb[4].mxu0 %v1117_v22  ;;  %507 = vmatmul.mubr.bf16.gmra.mrb[4].mxu1 %v1150_v24  ;;  %v85_v22 = vld [vmem:[%s1592_s2 + $0x18] sm:$0xff] }
  0x2b   :  { %418 = vmatprep.mubr.bf16.mxu0 %v1118_v23  ;;  %514 = vmatprep.mubr.bf16.mxu1 %v1154_v27  ;;  %v109_v27 = vld [vmem:[%s1592_s2 + $0xd8] sm:$0xff] }
  0x2c   :  { %1037 = vmatpush3.bf16.msra.mxu1 %v1162_v28 }
  0x2d   :  { %1038 = vmatprep.subr.bf16.mxu1 %v1163_v30 }
  0x30   :  { %1039 = vmatpush3.bf16.msra.mxu1 %v1163_v30 }
  0x31   :  { %1040 = vmatprep.subr.bf16.mxu1 %v1164_v51 }
  0x32   :  { %419 = vmatmul.mubr.bf16.gmra.mrb[8].mxu0 %v1120_v29  ;;  %515 = vmatmul.mubr.bf16.gmra.mrb[8].mxu1 %v1156_v32 }
  0x33   :  { %426 = vmatprep.mubr.bf16.mxu0 %v1121_v31  ;;  %522 = vmatprep.mubr.bf16.mxu1 %v1157_v33 }
  0x34   :  { %1041 = vmatpush3.bf16.msra.mxu1 %v1164_v51 }
  0x35   :  { %1042 = vmatprep.subr.bf16.mxu1 %v1165_v53 }
  0x38   :  { %1043 = vmatpush3.bf16.msra.mxu1 %v1165_v53 }
  0x39   :  { %1044 = vmatprep.subr.bf16.mxu1 %v1166_v54 }
  0x3a   :  { %427 = vmatmul.mubr.bf16.gmra.mrb[12].mxu0 %v1123_v34  ;;  %523 = vmatmul.mubr.bf16.gmra.mrb[12].mxu1 %v1159_v36 }
  0x3b   :  { %434 = vmatprep.mubr.bf16.mxu0 %v1124_v35 }
  0x3c   :  { %1045 = vmatpush3.bf16.msra.mxu1 %v1166_v54 }
  0x3d   :  { %1046 = vmatprep.subr.bf16.mxu1 %v1167_v55 }
  0x40   :  { %1047 = vmatpush3.bf16.msra.mxu1 %v1167_v55 }
  0x42   :  { %435 = vmatmul.mubr.bf16.gmra.mrb[16].mxu0 %v1126_v37 }
  0x43   :  { %442 = vmatprep.mubr.bf16.mxu0 %v1127_v38 }
  0x4a   :  { %443 = vmatmul.mubr.bf16.gmra.mrb[20].mxu0 %v1129_v39 }
  0x4b   :  { %450 = vmatprep.mubr.bf16.mxu0 %v1130_v40 }
  0x52   :  { %451 = vmatmul.mubr.bf16.gmra.mrb[24].mxu0 %v1132_v41  ;;  %v110_v41 = vld [vmem:[%s1592_s2 + $0xe0] sm:$0xff] }
  0x53   :  { %458 = vmatprep.mubr.bf16.mxu0 %v1133_v42 }
  0x5a   :  { %459 = vmatmul.mubr.bf16.gmra.mrb[28].mxu0 %v1135_v43  ;;  %v86_v43 = vld [vmem:[%s1592_s2 + $0x20] sm:$0xff] }
  0x5b   :  { %466 = vmatprep.mubr.bf16.mxu0 %v1136_v44  ;;  %v87_v44 = vld [vmem:[%s1592_s2 + $0x28] sm:$0xff] }
  0x62   :  { %467 = vmatmul.mubr.bf16.gmra.mrb[32].mxu0 %v1138_v45 }
  0x63   :  { %474 = vmatprep.mubr.bf16.mxu0 %v1139_v46 }
  0x6a   :  { %475 = vmatmul.mubr.bf16.gmra.mrb[36].mxu0 %v1141_v47 }
  0x6b   :  { %482 = vmatprep.mubr.bf16.mxu0 %v1145_v48 }
  0x72   :  { %483 = vmatmul.mubr.bf16.gmra.mrb[40].mxu0 %v1147_v49  ;;  %v111_v49 = vld [vmem:[%s1592_s2 + $0xe8] sm:$0xff] }
  0x73   :  { %490 = vmatprep.mubr.bf16.mxu0 %v1151_v50 }
  0x7a   :  { %491 = vmatmul.mubr.bf16.gmra.mrb[44].mxu0 %v1153_v52 }
  0xf5   :  { %v912_v56 = vpop.f32.mrb[0].mxu0  ;;  %v984_v58 = vpop.f32.mrb[0].mxu1 }
  0xf6   :  { %v913_v57 = vpop.f32.mrb[1].mxu0  ;;  %v985_v62 = vpop.f32.mrb[1].mxu1 }
  0xf7   :  { %v914_v59 = vadd.f32 %v913_v57, %v912_v56  ;;  %v915_v60 = vpop.f32.mrb[2].mxu0  ;;  %v986_v2 = vadd.f32 %v985_v62, %v984_v58  ;;  %v987_v3 = vpop.f32.mrb[2].mxu1 }
  0xf8   :  { %v916_v1 = vpop.f32.mrb[3].mxu0  ;;  %v988_v6 = vpop.f32.mrb[3].mxu1 }
  0xf9   :  { %v917_v4 = vadd.f32 %v916_v1, %v915_v60  ;;  %v1373_v7 = vadd.f32 %v986_v2, %v106_v61  ;;  %v989_v8 = vadd.f32 %v988_v6, %v987_v3  ;;  %v405_v9 = vadd.f32 %v914_v59, %v82_v63  ;;  %v112_v63 = vld [vmem:[%s1592_s2 + $0xf0] sm:$0xff]  ;;  %v89_v2 = vld [vmem:[%s1592_s2 + $0x38] sm:$0xff] }
  0xfa   :  { %v88_v1 = vld [vmem:[%s1592_s2 + $0x30] sm:$0xff] }
  0xfb   :  { %v408_v10 = vadd.f32 %v917_v4, %v83_v0  ;;  %v1375_v11 = vadd.f32 %v989_v8, %v107_v5  ;;  %v113_v8 = vld [vmem:[%s1592_s2 + $0xf8] sm:$0xff] }
  0xfd   :  { %v918_v12 = vpop.f32.mrb[4].mxu0  ;;  %v531_v13 = vpack.c.bf16 %v408_v10, %v405_v9  ;;  %v990_v15 = vpop.f32.mrb[4].mxu1  ;;  %v543_v16 = vpack.c.bf16 %v1375_v11, %v1373_v7 }
  0xfe   :  { %v919_v14 = vpop.f32.mrb[5].mxu0  ;;  %v991_v20 = vpop.f32.mrb[5].mxu1 }
  0xff   :  { %v920_v17 = vadd.f32 %v919_v14, %v918_v12  ;;  %v921_v18 = vpop.f32.mrb[6].mxu0  ;;  %1048 = vmatprep.mubr.bf16.mxu1 %v531_v13  ;;  %v992_v24 = vadd.f32 %v991_v20, %v990_v15  ;;  %v993_v25 = vpop.f32.mrb[6].mxu1 }
 0x100   :  { %v922_v23 = vpop.f32.mrb[7].mxu0  ;;  %v994_v28 = vpop.f32.mrb[7].mxu1 }
 0x101   :  { %v923_v26 = vadd.f32 %v922_v23, %v921_v18  ;;  %v1391_v29 = vadd.f32 %v992_v24, %v108_v19  ;;  %v995_v30 = vadd.f32 %v994_v28, %v993_v25  ;;  %v413_v31 = vadd.f32 %v920_v17, %v84_v21  ;;  %v90_v23 = vld [vmem:[%s1592_s2 + $0x40] sm:$0xff]  ;;  %v91_v24 = vld [vmem:[%s1592_s2 + $0x48] sm:$0xff] }
 0x103   :  { %v416_v32 = vadd.f32 %v923_v26, %v85_v22  ;;  %v1393_v33 = vadd.f32 %v995_v30, %v109_v27 }
 0x105   :  { %v532_v34 = vpack.c.bf16 %v416_v32, %v413_v31  ;;  %v924_v35 = vpop.f32.mrb[8].mxu0  ;;  %v996_v37 = vpop.f32.mrb[8].mxu1  ;;  %v544_v38 = vpack.c.bf16 %v1393_v33, %v1391_v29 }
 0x106   :  { %v925_v36 = vpop.f32.mrb[9].mxu0  ;;  %v997_v42 = vpop.f32.mrb[9].mxu1 }
 0x107   :  { %v926_v39 = vadd.f32 %v925_v36, %v924_v35  ;;  %v927_v40 = vpop.f32.mrb[10].mxu0  ;;  %1049 = vmatmul.mubr.bf16.vlgmr.msra.gmra.mrb[16].mxu1 %v532_v34  ;;  %v998_v46 = vadd.f32 %v997_v42, %v996_v37  ;;  %v999_v47 = vpop.f32.mrb[10].mxu1  ;;  %v92_v36 = vld [vmem:[%s1592_s2 + $0x50] sm:$0xff]  ;;  %v93_v37 = vld [vmem:[%s1592_s2 + $0x58] sm:$0xff] }
 0x108   :  { %v928_v45 = vpop.f32.mrb[11].mxu0  ;;  %v1000_v50 = vpop.f32.mrb[11].mxu1 }
 0x109   :  { %v929_v48 = vadd.f32 %v928_v45, %v927_v40  ;;  %v1409_v51 = vadd.f32 %v998_v46, %v110_v41  ;;  %v1001_v52 = vadd.f32 %v1000_v50, %v999_v47  ;;  %v421_v53 = vadd.f32 %v926_v39, %v86_v43 }
 0x10b   :  { %v424_v54 = vadd.f32 %v929_v48, %v87_v44  ;;  %v1411_v55 = vadd.f32 %v1001_v52, %v111_v49  ;;  %v94_v48 = vld [vmem:[%s1592_s2 + $0x60] sm:$0xff]  ;;  %v95_v49 = vld [vmem:[%s1592_s2 + $0x68] sm:$0xff] }
 0x10d   :  { %v930_v56 = vpop.f32.mrb[12].mxu0  ;;  %v533_v57 = vpack.c.bf16 %v424_v54, %v421_v53  ;;  %v1002_v59 = vpop.f32.mrb[12].mxu1  ;;  %v545_v60 = vpack.c.bf16 %v1411_v55, %v1409_v51 }
 0x10e   :  { %v931_v58 = vpop.f32.mrb[13].mxu0  ;;  %v1003_v0 = vpop.f32.mrb[13].mxu1 }
 0x10f   :  { %v932_v61 = vadd.f32 %v931_v58, %v930_v56  ;;  %v933_v62 = vpop.f32.mrb[14].mxu0  ;;  %1052 = vmatprep.mubr.bf16.mxu1 %v533_v57  ;;  %v1004_v4 = vadd.f32 %v1003_v0, %v1002_v59  ;;  %v1005_v5 = vpop.f32.mrb[14].mxu1 }
 0x110   :  { %v934_v3 = vpop.f32.mrb[15].mxu0  ;;  %v1006_v9 = vpop.f32.mrb[15].mxu1 }
 0x111   :  { %v935_v6 = vadd.f32 %v934_v3, %v933_v62  ;;  %v1427_v10 = vadd.f32 %v1004_v4, %v112_v63  ;;  %v1007_v12 = vadd.f32 %v1006_v9, %v1005_v5  ;;  %v429_v13 = vadd.f32 %v932_v61, %v88_v1  ;;  %v96_v62 = vld [vmem:[%s1592_s2 + $0x70] sm:$0xff]  ;;  %v97_v63 = vld [vmem:[%s1592_s2 + $0x78] sm:$0xff] }
 0x113   :  { %v432_v14 = vadd.f32 %v935_v6, %v89_v2  ;;  %v1429_v15 = vadd.f32 %v1007_v12, %v113_v8  ;;  %v98_v12 = vld [vmem:[%s1592_s2 + $0x80] sm:$0xff] }
 0x115   :  { %v936_v17 = vpop.f32.mrb[16].mxu0  ;;  %v534_v18 = vpack.c.bf16 %v432_v14, %v429_v13  ;;  %v546_v20 = vpack.c.bf16 %v1429_v15, %v1427_v10  ;;  %v99_v13 = vld [vmem:[%s1592_s2 + $0x88] sm:$0xff] }
 0x116   :  { %v937_v19 = vpop.f32.mrb[17].mxu0 }
 0x117   :  { %v938_v21 = vadd.f32 %v937_v19, %v936_v17  ;;  %v939_v22 = vpop.f32.mrb[18].mxu0  ;;  %1053 = vmatmul.mubr.bf16.gmra.mrb[20].mxu1 %v534_v18 }
 0x118   :  { %v940_v25 = vpop.f32.mrb[19].mxu0 }
 0x119   :  { %v941_v26 = vadd.f32 %v940_v25, %v939_v22  ;;  %v437_v27 = vadd.f32 %v938_v21, %v90_v23 }
 0x11b   :  { %v440_v28 = vadd.f32 %v941_v26, %v91_v24  ;;  %v100_v26 = vld [vmem:[%s1592_s2 + $0x90] sm:$0xff] }
 0x11d   :  { %v942_v30 = vpop.f32.mrb[20].mxu0  ;;  %v535_v31 = vpack.c.bf16 %v440_v28, %v437_v27  ;;  %v101_v27 = vld [vmem:[%s1592_s2 + $0x98] sm:$0xff] }
 0x11e   :  { %v943_v32 = vpop.f32.mrb[21].mxu0 }
 0x11f   :  { %v944_v34 = vadd.f32 %v943_v32, %v942_v30  ;;  %v945_v35 = vpop.f32.mrb[22].mxu0  ;;  %1056 = vmatprep.mubr.bf16.mxu1 %v535_v31 }
 0x120   :  { %v946_v39 = vpop.f32.mrb[23].mxu0 }
 0x121   :  { %v947_v40 = vadd.f32 %v946_v39, %v945_v35  ;;  %v445_v41 = vadd.f32 %v944_v34, %v92_v36 }
 0x123   :  { %v448_v42 = vadd.f32 %v947_v40, %v93_v37  ;;  %v102_v40 = vld [vmem:[%s1592_s2 + $0xa0] sm:$0xff] }
 0x125   :  { %v948_v43 = vpop.f32.mrb[24].mxu0  ;;  %v536_v44 = vpack.c.bf16 %v448_v42, %v445_v41  ;;  %v103_v41 = vld [vmem:[%s1592_s2 + $0xa8] sm:$0xff] }
 0x126   :  { %v949_v45 = vpop.f32.mrb[25].mxu0 }
 0x127   :  { %v950_v46 = vadd.f32 %v949_v45, %v948_v43  ;;  %v951_v47 = vpop.f32.mrb[26].mxu0  ;;  %1057 = vmatmul.mubr.bf16.gmra.mrb[24].mxu1 %v536_v44 }
 0x128   :  { %v952_v50 = vpop.f32.mrb[27].mxu0 }
 0x129   :  { %v953_v52 = vadd.f32 %v952_v50, %v951_v47  ;;  %v453_v53 = vadd.f32 %v950_v46, %v94_v48 }
 0x12b   :  { %v456_v54 = vadd.f32 %v953_v52, %v95_v49  ;;  %v104_v52 = vld [vmem:[%s1592_s2 + $0xb0] sm:$0xff] }
 0x12d   :  { %v954_v56 = vpop.f32.mrb[28].mxu0  ;;  %v537_v57 = vpack.c.bf16 %v456_v54, %v453_v53  ;;  %v105_v53 = vld [vmem:[%s1592_s2 + $0xb8] sm:$0xff] }
 0x12e   :  { %v955_v58 = vpop.f32.mrb[29].mxu0 }
 0x12f   :  { %v956_v59 = vadd.f32 %v955_v58, %v954_v56  ;;  %v957_v61 = vpop.f32.mrb[30].mxu0  ;;  %1060 = vmatprep.mubr.bf16.mxu1 %v537_v57 }
 0x130   :  { %v958_v0 = vpop.f32.mrb[31].mxu0 }
 0x131   :  { %v959_v1 = vadd.f32 %v958_v0, %v957_v61  ;;  %v461_v2 = vadd.f32 %v956_v59, %v96_v62 }
 0x133   :  { %v464_v3 = vadd.f32 %v959_v1, %v97_v63 }
 0x135   :  { %v960_v4 = vpop.f32.mrb[32].mxu0  ;;  %v538_v5 = vpack.c.bf16 %v464_v3, %v461_v2 }
 0x136   :  { %v961_v6 = vpop.f32.mrb[33].mxu0 }
 0x137   :  { %v962_v8 = vadd.f32 %v961_v6, %v960_v4  ;;  %v963_v9 = vpop.f32.mrb[34].mxu0  ;;  %1061 = vmatmul.mubr.bf16.gmra.mrb[28].mxu1 %v538_v5 }
 0x138   :  { %v964_v14 = vpop.f32.mrb[35].mxu0 }
 0x139   :  { %v965_v17 = vadd.f32 %v964_v14, %v963_v9  ;;  %v469_v18 = vadd.f32 %v962_v8, %v98_v12 }
 0x13b   :  { %v472_v19 = vadd.f32 %v965_v17, %v99_v13 }
 0x13d   :  { %v966_v21 = vpop.f32.mrb[36].mxu0  ;;  %v539_v22 = vpack.c.bf16 %v472_v19, %v469_v18 }
 0x13e   :  { %v967_v23 = vpop.f32.mrb[37].mxu0 }
 0x13f   :  { %v968_v24 = vadd.f32 %v967_v23, %v966_v21  ;;  %v969_v25 = vpop.f32.mrb[38].mxu0  ;;  %1064 = vmatprep.mubr.bf16.mxu1 %v539_v22 }
 0x140   :  { %v970_v28 = vpop.f32.mrb[39].mxu0 }
 0x141   :  { %v971_v30 = vadd.f32 %v970_v28, %v969_v25  ;;  %v477_v31 = vadd.f32 %v968_v24, %v100_v26 }
 0x143   :  { %v480_v32 = vadd.f32 %v971_v30, %v101_v27 }
 0x145   :  { %v972_v34 = vpop.f32.mrb[40].mxu0  ;;  %v540_v35 = vpack.c.bf16 %v480_v32, %v477_v31 }
 0x146   :  { %v973_v36 = vpop.f32.mrb[41].mxu0 }
 0x147   :  { %v974_v37 = vadd.f32 %v973_v36, %v972_v34  ;;  %v975_v39 = vpop.f32.mrb[42].mxu0  ;;  %1065 = vmatmul.mubr.bf16.gmra.mrb[32].mxu1 %v540_v35 }
 0x148   :  { %v976_v42 = vpop.f32.mrb[43].mxu0 }
 0x149   :  { %v977_v43 = vadd.f32 %v976_v42, %v975_v39  ;;  %v485_v44 = vadd.f32 %v974_v37, %v102_v40 }
 0x14b   :  { %v488_v45 = vadd.f32 %v977_v43, %v103_v41 }
 0x14d   :  { %v978_v46 = vpop.f32.mrb[44].mxu0  ;;  %v541_v47 = vpack.c.bf16 %v488_v45, %v485_v44 }
 0x14e   :  { %v979_v48 = vpop.f32.mrb[45].mxu0 }
 0x14f   :  { %v980_v49 = vadd.f32 %v979_v48, %v978_v46  ;;  %v981_v50 = vpop.f32.mrb[46].mxu0  ;;  %1068 = vmatprep.mubr.bf16.mxu1 %v541_v47 }
 0x150   :  { %v982_v54 = vpop.f32.mrb[47].mxu0 }
 0x151   :  { %v983_v56 = vadd.f32 %v982_v54, %v981_v50  ;;  %v493_v57 = vadd.f32 %v980_v49, %v104_v52 }
 0x153   :  { %v496_v58 = vadd.f32 %v983_v56, %v105_v53 }
 0x155   :  { %v542_v59 = vpack.c.bf16 %v496_v58, %v493_v57 }
 0x157   :  { %1069 = vmatmul.mubr.bf16.gmra.mrb[36].mxu1 %v542_v59 }
 0x158   :  { %1072 = vmatprep.mubr.bf16.mxu1 %v543_v16 }
 0x15f   :  { %1073 = vmatmul.mubr.bf16.gmra.mrb[40].mxu1 %v544_v38 }
 0x160   :  { %1076 = vmatprep.mubr.bf16.mxu1 %v545_v60 }
 0x167   :  { %1077 = vmatmul.mubr.bf16.gmra.mrb[44].mxu1 %v546_v20 }
 0x1da   :  { %v1050_v61 = vpop.f32.mrb[16].mxu1 }
 0x1db   :  { %v774_v62 = vmax.f32 %v1050_v61, 0.0  ;;  %v645_v63 = vpop.f32.mrb[17].mxu1 }
 0x1dc   :  { %v772_v0 = vmax.f32 %v645_v63, 0.0  ;;  %v1051_v1 = vpop.f32.mrb[18].mxu1 }
 0x1dd   :  { %806 = vst [vmem:[%s1593_s4 + $0x10] sm:$0xff] %v774_v62  ;;  %v775_v7 = vmax.f32 %v1051_v1, 0.0  ;;  %v648_v11 = vpop.f32.mrb[19].mxu1 }
 0x1de   :  { %804 = vst [vmem:[%s1593_s4] sm:$0xff] %v772_v0  ;;  %v773_v16 = vmax.f32 %v648_v11, 0.0 }
 0x1df   :  { %807 = vst [vmem:[%s1593_s4 + $0x18] sm:$0xff] %v775_v7 }
 0x1e0   :  { %805 = vst [vmem:[%s1593_s4 + $0x8] sm:$0xff] %v773_v16 }
 0x1ea   :  { %v1054_v29 = vpop.f32.mrb[20].mxu1 }
 0x1eb   :  { %v778_v33 = vmax.f32 %v1054_v29, 0.0  ;;  %v661_v38 = vpop.f32.mrb[21].mxu1 }
 0x1ec   :  { %v776_v51 = vmax.f32 %v661_v38, 0.0  ;;  %v1055_v55 = vpop.f32.mrb[22].mxu1 }
 0x1ed   :  { %810 = vst [vmem:[%s1593_s4 + $0x30] sm:$0xff] %v778_v33  ;;  %v779_v60 = vmax.f32 %v1055_v55, 0.0  ;;  %v664_v10 = vpop.f32.mrb[23].mxu1 }
 0x1ee   :  { %808 = vst [vmem:[%s1593_s4 + $0x20] sm:$0xff] %v776_v51  ;;  %v777_v15 = vmax.f32 %v664_v10, 0.0 }
 0x1ef   :  { %811 = vst [vmem:[%s1593_s4 + $0x38] sm:$0xff] %v779_v60 }
 0x1f0   :  { %809 = vst [vmem:[%s1593_s4 + $0x28] sm:$0xff] %v777_v15 }
 0x1fa   :  { %v1058_v20 = vpop.f32.mrb[24].mxu1 }
 0x1fb   :  { %v782_v2 = vmax.f32 %v1058_v20, 0.0  ;;  %v677_v3 = vpop.f32.mrb[25].mxu1 }
 0x1fc   :  { %v780_v4 = vmax.f32 %v677_v3, 0.0  ;;  %v1059_v5 = vpop.f32.mrb[26].mxu1 }
 0x1fd   :  { %814 = vst [vmem:[%s1593_s4 + $0x50] sm:$0xff] %v782_v2  ;;  %v783_v6 = vmax.f32 %v1059_v5, 0.0  ;;  %v680_v8 = vpop.f32.mrb[27].mxu1 }
 0x1fe   :  { %812 = vst [vmem:[%s1593_s4 + $0x40] sm:$0xff] %v780_v4  ;;  %v781_v9 = vmax.f32 %v680_v8, 0.0 }
 0x1ff   :  { %815 = vst [vmem:[%s1593_s4 + $0x58] sm:$0xff] %v783_v6 }
 0x200   :  { %813 = vst [vmem:[%s1593_s4 + $0x48] sm:$0xff] %v781_v9 }
 0x20a   :  { %v1062_v12 = vpop.f32.mrb[28].mxu1 }
 0x20b   :  { %v786_v13 = vmax.f32 %v1062_v12, 0.0  ;;  %v693_v14 = vpop.f32.mrb[29].mxu1 }
 0x20c   :  { %v784_v17 = vmax.f32 %v693_v14, 0.0  ;;  %v1063_v18 = vpop.f32.mrb[30].mxu1 }
 0x20d   :  { %818 = vst [vmem:[%s1593_s4 + $0x70] sm:$0xff] %v786_v13  ;;  %v787_v19 = vmax.f32 %v1063_v18, 0.0  ;;  %v696_v21 = vpop.f32.mrb[31].mxu1 }
 0x20e   :  { %816 = vst [vmem:[%s1593_s4 + $0x60] sm:$0xff] %v784_v17  ;;  %v785_v22 = vmax.f32 %v696_v21, 0.0 }
 0x20f   :  { %819 = vst [vmem:[%s1593_s4 + $0x78] sm:$0xff] %v787_v19 }
 0x210   :  { %817 = vst [vmem:[%s1593_s4 + $0x68] sm:$0xff] %v785_v22 }
 0x21a   :  { %v1066_v23 = vpop.f32.mrb[32].mxu1 }
 0x21b   :  { %v790_v24 = vmax.f32 %v1066_v23, 0.0  ;;  %v709_v25 = vpop.f32.mrb[33].mxu1 }
 0x21c   :  { %v788_v26 = vmax.f32 %v709_v25, 0.0  ;;  %v1067_v27 = vpop.f32.mrb[34].mxu1 }
 0x21d   :  { %822 = vst [vmem:[%s1593_s4 + $0x90] sm:$0xff] %v790_v24  ;;  %v791_v28 = vmax.f32 %v1067_v27, 0.0  ;;  %v712_v30 = vpop.f32.mrb[35].mxu1 }
 0x21e   :  { %820 = vst [vmem:[%s1593_s4 + $0x80] sm:$0xff] %v788_v26  ;;  %v789_v31 = vmax.f32 %v712_v30, 0.0 }
 0x21f   :  { %823 = vst [vmem:[%s1593_s4 + $0x98] sm:$0xff] %v791_v28 }
 0x220   :  { %821 = vst [vmem:[%s1593_s4 + $0x88] sm:$0xff] %v789_v31 }
 0x22a   :  { %v1070_v32 = vpop.f32.mrb[36].mxu1 }
 0x22b   :  { %v794_v34 = vmax.f32 %v1070_v32, 0.0  ;;  %v725_v35 = vpop.f32.mrb[37].mxu1 }
 0x22c   :  { %v792_v36 = vmax.f32 %v725_v35, 0.0  ;;  %v1071_v37 = vpop.f32.mrb[38].mxu1 }
 0x22d   :  { %826 = vst [vmem:[%s1593_s4 + $0xb0] sm:$0xff] %v794_v34  ;;  %v795_v39 = vmax.f32 %v1071_v37, 0.0  ;;  %v728_v40 = vpop.f32.mrb[39].mxu1 }
 0x22e   :  { %824 = vst [vmem:[%s1593_s4 + $0xa0] sm:$0xff] %v792_v36  ;;  %v793_v41 = vmax.f32 %v728_v40, 0.0 }
 0x22f   :  { %827 = vst [vmem:[%s1593_s4 + $0xb8] sm:$0xff] %v795_v39 }
 0x230   :  { %825 = vst [vmem:[%s1593_s4 + $0xa8] sm:$0xff] %v793_v41 }
 0x232   :  { %v1074_v42 = vpop.f32.mrb[40].mxu1 }
 0x233   :  { %v798_v43 = vmax.f32 %v1074_v42, 0.0  ;;  %v741_v44 = vpop.f32.mrb[41].mxu1 }
 0x234   :  { %v796_v45 = vmax.f32 %v741_v44, 0.0  ;;  %v1075_v46 = vpop.f32.mrb[42].mxu1 }
 0x235   :  { %830 = vst [vmem:[%s1593_s4 + $0xd0] sm:$0xff] %v798_v43  ;;  %v799_v47 = vmax.f32 %v1075_v46, 0.0  ;;  %v744_v48 = vpop.f32.mrb[43].mxu1 }
 0x236   :  { %828 = vst [vmem:[%s1593_s4 + $0xc0] sm:$0xff] %v796_v45  ;;  %v797_v49 = vmax.f32 %v744_v48, 0.0 }
 0x237   :  { %831 = vst [vmem:[%s1593_s4 + $0xd8] sm:$0xff] %v799_v47 }
 0x238   :  { %829 = vst [vmem:[%s1593_s4 + $0xc8] sm:$0xff] %v797_v49 }
 0x23a   :  { %v1078_v50 = vpop.f32.mrb[44].mxu1 }
 0x23b   :  { %v802_v52 = vmax.f32 %v1078_v50, 0.0  ;;  %v757_v53 = vpop.f32.mrb[45].mxu1 }
 0x23c   :  { %v800_v54 = vmax.f32 %v757_v53, 0.0  ;;  %v1079_v56 = vpop.f32.mrb[46].mxu1 }
 0x23d   :  { %834 = vst [vmem:[%s1593_s4 + $0xf0] sm:$0xff] %v802_v52  ;;  %v803_v57 = vmax.f32 %v1079_v56, 0.0  ;;  %v760_v58 = vpop.f32.mrb[47].mxu1 }
 0x23e   :  { %832 = vst [vmem:[%s1593_s4 + $0xe0] sm:$0xff] %v800_v54  ;;  %v801_v59 = vmax.f32 %v760_v58, 0.0 }
 0x23f   :  { %835 = vst [vmem:[%s1593_s4 + $0xf8] sm:$0xff] %v803_v57 }
 0x240   :  { %833 = vst [vmem:[%s1593_s4 + $0xe8] sm:$0xff] %v801_v59 }

</bundles_post_ra>
